<compile_context>
chip_gen: v7x
topology: tpu7x:2x2x1
jax: 0.10.0
libtpu: 0.0.40
codegen_flags: <defaults>
</compile_context>

<pallas_src>
import jax
import jax.numpy as jnp
from jax.experimental import pallas as pl
from jax.experimental.pallas import tpu as pltpu


def an_mlp_kernel(x_ref, w1_ref, b1_ref, w2_ref, b2_ref, o_ref):
    # Cast the streamed x tile to bf16 in-kernel (VPU op, hidden under the
    # HBM-bound x DMA; avoids a separate XLA pad/cast pass over x).
    x = x_ref[...].astype(jnp.bfloat16)                      # (TB, 784)
    # fc1 on MXU (bf16 x bf16 -> f32 acc) + bias + ReLU.
    h = jnp.dot(x, w1_ref[...],
                preferred_element_type=jnp.float32)          # (TB, 128)
    h = jnp.maximum(h + b1_ref[...], 0.0)                    # VPU
    # fc2 on MXU, fully aligned (128x128 padded W2); padded cols are zero.
    o = jnp.dot(h.astype(jnp.bfloat16), w2_ref[...],
                preferred_element_type=jnp.float32)          # (TB, 128)
    c = o_ref.shape[-1]                                      # 10
    # Narrow (TB, 10) f32 store: masked vst, but ~12x fewer HBM bytes than a
    # padded-128 f32 writeback, and the kernel is memory-bound with store slack.
    o_ref[...] = o[:, :c] + b2_ref[...]


def _round_up(n, m):
    return ((n + m - 1) // m) * m


def prepare_params(w1, b1, w2, b2):
    """One-time pad+cast of the weights/biases (hoisted out of the per-call path).

    w1: (784, 64), b1: (64,) or (1,64), w2: (64, 10), b2: (10,) or (1,10).
    Returns (w1_p, b1_p, w2_p, b2_p) with hidden/output dims padded to 128 and
    matmul operands cast to bf16; biases stay f32.  Zero padding keeps the
    first `num_classes` logits exact.
    """
    F_in, H = w1.shape
    C = w2.shape[1]
    H_pad = _round_up(max(H, 128), 128)   # 64  -> 128
    C_pad = _round_up(max(C, 128), 128)   # 10  -> 128 (MXU-aligned fc2)

    w1_p = jnp.pad(w1, ((0, 0), (0, H_pad - H))).astype(jnp.bfloat16)
    b1_p = jnp.pad(jnp.reshape(b1, (1, H)),
                   ((0, 0), (0, H_pad - H))).astype(jnp.float32)
    w2_p = jnp.pad(w2, ((0, H_pad - H), (0, C_pad - C))).astype(jnp.bfloat16)
    b2_p = jnp.reshape(b2, (1, C)).astype(jnp.float32)
    return w1_p, b1_p, w2_p, b2_p


def an_forward(x, params, *, block_batch=1024):
    """x: (B, 784) f32 (or bf16); params from prepare_params(). Returns (B, 10) f32."""
    w1_p, b1_p, w2_p, b2_p = params
    B, F_in = x.shape
    H_pad = w1_p.shape[1]
    C_pad = w2_p.shape[1]
    C = b2_p.shape[1]

    # Batch tile: multiple of 8 sublanes, capped at block_batch.
    B8 = _round_up(max(B, 8), 8)
    TB = min(_round_up(block_batch, 8), B8)
    # Guarantee >= 2 grid tiles when the batch permits, so the "parallel" batch
    # axis can be sharded across v7x's 2 TensorCores (no-op on v5e/v6e).
    if B8 >= 16 and pl.cdiv(B, TB) < 2:
        TB = _round_up(pl.cdiv(B8, 2), 8)

    grid = (pl.cdiv(B, TB),)   # ragged last block: OOB rows are discarded

    out = pl.pallas_call(
        an_mlp_kernel,
        out_shape=jax.ShapeDtypeStruct((B, C), jnp.float32),
        grid=grid,
        in_specs=[
            pl.BlockSpec((TB, F_in), lambda i: (i, 0)),      # x: streamed, unpadded
            pl.BlockSpec((F_in, H_pad), lambda i: (0, 0)),   # W1: VMEM-resident
            pl.BlockSpec((1, H_pad), lambda i: (0, 0)),      # b1: VMEM-resident
            pl.BlockSpec((H_pad, C_pad), lambda i: (0, 0)),  # W2: VMEM-resident
            pl.BlockSpec((1, C), lambda i: (0, 0)),          # b2: VMEM-resident
        ],
        out_specs=pl.BlockSpec((TB, C), lambda i: (i, 0)),   # narrow f32 logits
        compiler_params=pltpu.CompilerParams(
            dimension_semantics=("parallel",)),
    )(x, w1_p, b1_p, w2_p, b2_p)

    return out


def init_params(key, input_size, hidden, num_classes):
    # PyTorch Linear default init: U(-1/sqrt(fan_in), 1/sqrt(fan_in)).
    k1, k2, k3, k4 = jax.random.split(key, 4)
    bound1 = 1.0 / jnp.sqrt(jnp.float32(input_size))
    bound2 = 1.0 / jnp.sqrt(jnp.float32(hidden))
    w1 = jax.random.uniform(k1, (input_size, hidden), jnp.float32,
                            minval=-bound1, maxval=bound1)
    b1 = jax.random.uniform(k2, (1, hidden), jnp.float32,
                            minval=-bound1, maxval=bound1)
    w2 = jax.random.uniform(k3, (hidden, num_classes), jnp.float32,
                            minval=-bound2, maxval=bound2)
    b2 = jax.random.uniform(k4, (1, num_classes), jnp.float32,
                            minval=-bound2, maxval=bound2)
    return w1, b1, w2, b2


if __name__ == "__main__":
    input_size = 28 * 28
    hidden = 64
    num_classes = 10
    batch = 20  # exercises the >=2-tile grid AND a ragged last block (TB=16)

    key = jax.random.PRNGKey(0)
    kx, kp = jax.random.split(key)
    x = jax.random.normal(kx, (batch, input_size), jnp.float32)
    w1, b1, w2, b2 = init_params(kp, input_size, hidden, num_classes)

    params = prepare_params(w1, b1, w2, b2)   # one-time pad+cast
    out = an_forward(x, params)
    jax.block_until_ready(out)

    # Reference: plain-JAX f32 forward (same math as the PyTorch module).
    # Kernel uses bf16 matmul operands with f32 accumulation -> loose tolerance.
    ref = jnp.maximum(x @ w1 + b1, 0.0) @ w2 + b2
    assert out.shape == (batch, num_classes)
    assert jnp.allclose(out, ref, atol=5e-2, rtol=5e-2), (
        float(jnp.max(jnp.abs(out - ref))))

    print("KERNEL_OK")
</pallas_src>

<mosaic_0001>
module attributes {stable_mosaic.version = 11 : i64} {
  func.func @an_mlp_kernel(%arg0: i32, %arg1: memref<16x784xf32, #tpu.memory_space<vmem>>, %arg2: memref<784x128xbf16, #tpu.memory_space<vmem>>, %arg3: memref<1x128xf32, #tpu.memory_space<vmem>>, %arg4: memref<128x128xbf16, #tpu.memory_space<vmem>>, %arg5: memref<1x10xf32, #tpu.memory_space<vmem>>, %arg6: memref<16x10xf32, #tpu.memory_space<vmem>>) attributes {dimension_semantics = [#tpu.dimension_semantics<parallel>], iteration_bounds = array<i64: 2>, scalar_prefetch = 0 : i64, scratch_operands = 0 : i64, tpu.core_type = #tpu.core_type<tc>, window_params = [{transform_indices = @transform_0, window_bounds = array<i64: 16, 784>}, {pipeline_mode = #tpu.pipeline_mode<synchronous>, transform_indices = @transform_1, window_bounds = array<i64: 784, 128>}, {pipeline_mode = #tpu.pipeline_mode<synchronous>, transform_indices = @transform_2, window_bounds = array<i64: 1, 128>}, {pipeline_mode = #tpu.pipeline_mode<synchronous>, transform_indices = @transform_3, window_bounds = array<i64: 128, 128>}, {pipeline_mode = #tpu.pipeline_mode<synchronous>, transform_indices = @transform_4, window_bounds = array<i64: 1, 10>}, {transform_indices = @transform_5, window_bounds = array<i64: 16, 10>}]} {
    %c0 = arith.constant 0 : index
    %c0_0 = arith.constant 0 : index
    %0 = vector.load %arg1[%c0, %c0_0] : memref<16x784xf32, #tpu.memory_space<vmem>>, vector<16x784xf32>
    %1 = arith.truncf %0 : vector<16x784xf32> to vector<16x784xbf16>
    %c0_1 = arith.constant 0 : index
    %c0_2 = arith.constant 0 : index
    %2 = vector.load %arg2[%c0_1, %c0_2] : memref<784x128xbf16, #tpu.memory_space<vmem>>, vector<784x128xbf16>
    %cst = arith.constant dense<0.000000e+00> : vector<16x128xf32>
    %3 = tpu.matmul %1, %2, %cst {dimension_numbers = #tpu.dot_dimension_numbers<[1], [0], [0], [1], [0, 0, 1, 1], [], []>} : vector<16x784xbf16>, vector<784x128xbf16>, vector<16x128xf32> -> vector<16x128xf32>
    %c0_3 = arith.constant 0 : index
    %c0_4 = arith.constant 0 : index
    %4 = vector.load %arg3[%c0_3, %c0_4] : memref<1x128xf32, #tpu.memory_space<vmem>>, vector<1x128xf32>
    %5 = vector.broadcast %4 : vector<1x128xf32> to vector<16x128xf32>
    %6 = arith.addf %3, %5 : vector<16x128xf32>
    %cst_5 = arith.constant 0.000000e+00 : f32
    %7 = vector.broadcast %cst_5 : f32 to vector<16x128xf32>
    %8 = arith.maximumf %6, %7 : vector<16x128xf32>
    %9 = arith.truncf %8 : vector<16x128xf32> to vector<16x128xbf16>
    %c0_6 = arith.constant 0 : index
    %c0_7 = arith.constant 0 : index
    %10 = vector.load %arg4[%c0_6, %c0_7] : memref<128x128xbf16, #tpu.memory_space<vmem>>, vector<128x128xbf16>
    %cst_8 = arith.constant dense<0.000000e+00> : vector<16x128xf32>
    %11 = tpu.matmul %9, %10, %cst_8 {dimension_numbers = #tpu.dot_dimension_numbers<[1], [0], [0], [1], [0, 0, 1, 1], [], []>} : vector<16x128xbf16>, vector<128x128xbf16>, vector<16x128xf32> -> vector<16x128xf32>
    %12 = vector.extract_strided_slice %11 {offsets = [0, 0], sizes = [16, 10], strides = [1, 1]} : vector<16x128xf32> to vector<16x10xf32>
    %c0_9 = arith.constant 0 : index
    %c0_10 = arith.constant 0 : index
    %13 = vector.load %arg5[%c0_9, %c0_10] : memref<1x10xf32, #tpu.memory_space<vmem>>, vector<1x10xf32>
    %14 = vector.broadcast %13 : vector<1x10xf32> to vector<16x10xf32>
    %15 = arith.addf %12, %14 : vector<16x10xf32>
    %c0_11 = arith.constant 0 : index
    %c0_12 = arith.constant 0 : index
    %16 = vector.load %arg6[%c0_11, %c0_12] : memref<16x10xf32, #tpu.memory_space<vmem>>, vector<16x10xf32>
    tpu.vector_store %arg6[%c0_11, %c0_12], %15 {strides = array<i32>} : memref<16x10xf32, #tpu.memory_space<vmem>>, vector<16x10xf32>,
    return
  }
  func.func @transform_0(%arg0: i32) -> (i32, i32) {
    %c0_i32 = arith.constant 0 : i32
    %c0_i32_0 = arith.constant 0 : i32
    return %arg0, %c0_i32 : i32, i32
  }
  func.func @transform_1(%arg0: i32) -> (i32, i32) {
    %c0_i32 = arith.constant 0 : i32
    %c0_i32_0 = arith.constant 0 : i32
    %c0_i32_1 = arith.constant 0 : i32
    return %c0_i32, %c0_i32_0 : i32, i32
  }
  func.func @transform_2(%arg0: i32) -> (i32, i32) {
    %c0_i32 = arith.constant 0 : i32
    %c0_i32_0 = arith.constant 0 : i32
    %c0_i32_1 = arith.constant 0 : i32
    return %c0_i32, %c0_i32_0 : i32, i32
  }
  func.func @transform_3(%arg0: i32) -> (i32, i32) {
    %c0_i32 = arith.constant 0 : i32
    %c0_i32_0 = arith.constant 0 : i32
    %c0_i32_1 = arith.constant 0 : i32
    return %c0_i32, %c0_i32_0 : i32, i32
  }
  func.func @transform_4(%arg0: i32) -> (i32, i32) {
    %c0_i32 = arith.constant 0 : i32
    %c0_i32_0 = arith.constant 0 : i32
    %c0_i32_1 = arith.constant 0 : i32
    return %c0_i32, %c0_i32_0 : i32, i32
  }
  func.func @transform_5(%arg0: i32) -> (i32, i32) {
    %c0_i32 = arith.constant 0 : i32
    %c0_i32_0 = arith.constant 0 : i32
    return %arg0, %c0_i32 : i32, i32
  }
}

</mosaic_0001>

<bundles_post_ra>
// kernel: tpu_custom_call.1
= control target key start
LH: loop header
LB: loop body
LE: loop exit
PB: predicated region body
PF: predicated region fallthrough
CT: control target
= control target key end

     0   :  { %10 = vsyncpa [#allocation3], 0  ;;  %s2112_s0 = inlined_call_operand.hbm [shape: f32[20,784], index: 0, kind: input, shape index: {}]   ;;  %s2113_s1 = inlined_call_operand.hbm [shape: bf16[784,128], index: 1, kind: input, shape index: {}]   ;;  %s2114_s2 = inlined_call_operand.vmem [shape: f32[1,128], index: 2, kind: input, shape index: {}]   ;;  %s2115_s3 = inlined_call_operand.hbm [shape: bf16[128,128], index: 3, kind: input, shape index: {}]   ;;  %s2116_s4 = inlined_call_operand.vmem [shape: f32[1,10], index: 4, kind: input, shape index: {}]   ;;  %s2117_s5 = inlined_call_operand.vmem [shape: f32[20,10], index: 5, kind: output, shape index: {}]  }
   0x1   :  { %12 = vsyncpa [#allocation3 + $0x1], 0 }
   0x2   :  { %13 = vsyncpa [#allocation5], 0  ;;  %s1855_s18 = smov 0   ;;  %s1857_s19 = smov 0  }
   0x3   :  { %s1859_s20 = smov 0   ;;  %s1861_s21 = smov 0  }
   0x4 LB: > { %s1874_s22 = sadd.s32 4294967295, %s1782_s21   ;;  %s1877_s23 = sadd.s32 1, %s1782_s21   ;;  %s1782_s21 = sphi %s1861_s21, %s2135_s21   ;;  %s1778_s20 = sphi %s1859_s20, %s2134_s20   ;;  %s1774_s19 = sphi %s1857_s19, %s2133_s19   ;;  %s1770_s18 = sphi %s1855_s18, %s2132_s18  }
   0x5   : > { %s23_s24 = ssub.s32 %s1782_s21, %s1877_s23  ;;  %s26_s25 = sadd.s32 1, %s1778_s20 }
   0x6   : > { %p24_p0 = scmp.eq.s32.totalorder %s23_s24, 0  ;;  %p33_p1 = scmp.ne.s32.totalorder %s1778_s20, %s1774_s19 }
   0x7   : > { %p34_p2 = scmp.eq.s32.totalorder %s1782_s21, 0  ;;  %p39_p3 = scmp.ne.s32.totalorder %s1774_s19, %s1770_s18 }
   0x8   : > { %s1887_s26 = scalar_select %p24_p0, %s1778_s20, %s26_s25  }
   0x9   : > { %p1889_p4 = por %p34_p2, %p33_p1  ;;  %p2118_p5 = scmp.eq.s32.totalorder %s1874_s22, 0 }
   0xa   : > { %p147_p6 = scmp.eq.s32.totalorder %s1874_s22, 1  ;;  %p1246_p7 = scmp.ge.s32.totalorder %s1782_s21, 1 }
   0xb   : > { %s2121_s27 = scalar_select %p1889_p4, 1, 0 }
   0xc   : > { %p1898_p8 = por %p2118_p5, %p39_p3  ;;  %p160_p9 = scmp.lt.s32.totalorder %s1782_s21, 3 }
   0xd   : > { %p1903_p10 = por %p147_p6, %p33_p1  ;;  %s1816_s6 = smov [#allocation4]  }
   0xe   : > { %s2122_s28 = scalar_select %p1898_p8, 1, 0 }
   0xf   : > { %s2123_s29 = scalar_select %p1903_p10, 1, 0 }
  0x10   : > { %p1907_p11 = pnand %p1246_p7, %p160_p9  ;;  %s172_s7 = sshll.u32 %s1816_s6, 4  ;;  %s173_s7 = int_to_ptr.vmem [resolvable:$true] %s172_s7 }
  0x11   : > { %s1817_s9 = smov [#allocation6]   ;;  %s1628_s13 = scalar_lea.hbm %s2113_s1, 6272 }
  0x12   : > { %s2124_s30 = scalar_select %p1907_p11, 1, 0 }
  0x13   : > { %p1456_p12 = pneg %p1907_p11  ;;  %s188_s10 = sshll.u32 %s1817_s9, 4  ;;  %s1919_s10 = int_to_ptr.vmem [resolvable:$true] %s188_s10 }
  0x14   : > { %p1629_p0 = scmp.ne.s32.totalorder %s2113_s1, %s1628_s13  ;;  %p1635_p6 = scmp.lt.u32.totalorder %s1628_s13, %s2113_s1 }
  0x15   : > { %p1915_p13 = pnand %p1456_p12, %p2118_p5 }
  0x17   : > { %p1630_p1 = pneg %p1915_p13 }
  0x19   : > { %p1631_p2 = pnand %p1630_p1, %p1629_p0 }
  0x1b   : > { %p1632_p3 = pneg %p1631_p2 }
  0x1d   : > { %p1637_p7 = pnand %p1635_p6, %p1632_p3 }
  0x1f   : > { %1640 = shalt.err (!%p1637_p7)
}
  0x20   : > { %s1641_s18 = scalar_lea.vmem %s173_s7, 6272  ;;  %p1649_p10 = scmp.lt.s32.totalorder %s173_s7, %s173_s7 }
  0x21   : > { %p1642_p9 = scmp.ne.s32.totalorder %s173_s7, %s1641_s18  ;;  %p1650_p8 = scmp.lt.s32.totalorder %s1641_s18, %s1641_s18 }
  0x23   : > { %p1644_p12 = pnand %p1642_p9, %p1630_p1  ;;  %p1651_p11 = por %p1650_p8, %p1649_p10 }
  0x25   : > { %p1645_p5 = pneg %p1644_p12 }
  0x27   : > { %p1652_p4 = pnand %p1651_p11, %p1645_p5 }
  0x29   : > { %1655 = shalt.err (!%p1652_p4)
}
  0x2a   : > { %s1818_s24 = smov 64   ;;  %s1819_s25 = smov 4  }
  0x2b   : > { %1459 = dma.hbm_to_vmem [thread:$0]  (!%p1915_p13), %s2113_s1, 6272, %s173_s7, [#allocation5], %s1818_s24, %s1818_s24, %s1819_s25  }
  0x2c   : > { %s1656_s13 = scalar_lea.hbm %s2115_s3, 1024 }
  0x2d   : > { %p1657_p0 = scmp.ne.s32.totalorder %s2115_s3, %s1656_s13  ;;  %p1663_p8 = scmp.lt.u32.totalorder %s1656_s13, %s2115_s3 }
  0x2f   : > { %p1659_p4 = pnand %p1657_p0, %p1630_p1 }
  0x31   : > { %p1660_p5 = pneg %p1659_p4 }
  0x33   : > { %p1665_p10 = pnand %p1663_p8, %p1660_p5 }
  0x35   : > { %1668 = shalt.err (!%p1665_p10)
}
  0x36   : > { %s1669_s7 = scalar_lea.vmem %s1919_s10, 1024  ;;  %p1677_p6 = scmp.lt.s32.totalorder %s1919_s10, %s1919_s10 }
  0x37   : > { %p1670_p11 = scmp.ne.s32.totalorder %s1919_s10, %s1669_s7  ;;  %p1678_p7 = scmp.lt.s32.totalorder %s1669_s7, %s1669_s7 }
  0x39   : > { %p1672_p2 = pnand %p1670_p11, %p1630_p1  ;;  %p1679_p9 = por %p1678_p7, %p1677_p6 }
  0x3b   : > { %p1673_p3 = pneg %p1672_p2 }
  0x3d   : > { %p1680_p12 = pnand %p1679_p9, %p1673_p3 }
  0x3f   : > { %1683 = shalt.err (!%p1680_p12)
}
  0x40   : > { %1462 = dma.hbm_to_vmem [thread:$0]  (!%p1915_p13), %s2115_s3, 1024, %s1919_s10, [#allocation5], %s1818_s24, %s1818_s24, %s1819_s25  }
  0x41   : > { %p1249_p0 = scmp.ge.s32.totalorder %s1782_s21, 2 }
  0x42   : > { %p2126_p4 = scmp.ne.s32.totalorder (!%p1249_p0), %s2121_s27, 0 }
  0x43   : > { %201 = sbr.rel (%p1249_p0) target bundleno = 110 (0x6e), region = 32 }
  0x4a   : > { %204 = sbr.rel (!%p2126_p4) target bundleno = 110 (0x6e), region = 36  ;;  %s205_s9 = sand.u32 (%p2126_p4), 1, %s1778_s20  }
  0x4b   : > { %s1250_s11 = sshll.u32 (%p2126_p4), %s1782_s21, 1  ;;  %s1444_s12 = smul.u32 (%p2126_p4), 112, %s205_s9 }
  0x4c   : > { %s211_s13 = ssub.s32 (%p2126_p4), 3, %s1250_s11  ;;  %s1976_s15 = scalar_lea.sflag (%p2126_p4), [#allocation3], %s205_s9 }
  0x4d   : > { %p212_p1 = scmp.lt.s32.totalorder (%p2126_p4), %s211_s13, 2  ;;  %s209_s10 = scalar_lea.vmem (%p2126_p4), [#allocation2], %s1444_s12 }
  0x51   : > { %s2137_s13 = smov (!%p212_p1, %s211_s13), 2 }
  0x52   : > { %s1973_s8 = smul.u32 896, %s2137_s13 }
  0x54   : > { %s217_s14 = ssub.s32 1792, %s1973_s8 }
  0x55   : > { %218 = vsyncadd %s1976_s15, %s217_s14  ;;  %p1253_p13 = scmp.ne.s32.totalorder %s1973_s8, 0  ;;  %s1445_s27 = smul.u32 1792, %s1782_s21 }
  0x56   : > { %s224_s24 = sshll.u32 %s209_s10, 4  ;;  %s1688_s21 = scalar_lea.hbm %s2112_s0, 2688  ;;  %s1986_s24 = int_to_ptr.vmem [resolvable:$true] %s224_s24 }
  0x57   : > { %s1984_s17 = scalar_lea.hbm %s2112_s0, %s1445_s27 }
  0x58   : > { %s1684_s7 = scalar_lea.hbm %s1984_s17, %s1973_s8  ;;  %p1689_p11 = scmp.lt.u32.totalorder %s1984_s17, %s2112_s0 }
  0x59   : > { %p1685_p5 = scmp.ne.s32.totalorder %s1984_s17, %s1684_s7  ;;  %p1690_p2 = scmp.lt.u32.totalorder %s1688_s21, %s1684_s7 }
  0x5a   : > { %p1692_p6 = scmp.lt.u32.totalorder %s1684_s7, %s1984_s17 }
  0x5b   : > { %p1686_p8 = pnand %p1685_p5, %p1253_p13  ;;  %p1691_p3 = por %p1690_p2, %p1689_p11 }
  0x5d   : > { %p1687_p10 = pneg %p1686_p8  ;;  %p1693_p7 = por %p1692_p6, %p1691_p3 }
  0x5f   : > { %p1694_p9 = pnand %p1693_p7, %p1687_p10 }
  0x61   : > { %1697 = shalt.err (!%p1694_p9)
}
  0x62   : > { %s1698_s12 = scalar_lea.vmem %s1986_s24, %s1973_s8  ;;  %s1820_s13 = smov [#allocation2]  }
  0x63   : > { %p1699_p12 = scmp.ne.s32.totalorder %s1986_s24, %s1698_s12  ;;  %s1702_s14 = sshll.u32 %s1820_s13, 4  ;;  %s1703_s14 = int_to_ptr.vmem [resolvable:$false] %s1702_s14 }
  0x64   : > { %s1704_s10 = scalar_lea.vmem %s1703_s14, 3584  ;;  %p1705_p1 = scmp.lt.s32.totalorder %s1986_s24, %s1703_s14 }
  0x65   : > { %p1700_p0 = pnand %p1699_p12, %p1253_p13  ;;  %p1706_p5 = scmp.lt.s32.totalorder %s1704_s10, %s1698_s12 }
  0x67   : > { %p1701_p4 = pneg %p1700_p0  ;;  %p1707_p8 = por %p1706_p5, %p1705_p1 }
  0x69   : > { %p1708_p11 = pnand %p1707_p8, %p1701_p4 }
  0x6b   : > { %1711 = shalt.err (!%p1708_p11)
}
  0x6c   : > { %s1821_s27 = smov 896   ;;  %s1822_s25 = smov 56  }
  0x6d   : > { %230 = dma.hbm_to_vmem [thread:$0]  (%p1253_p13), %s1984_s17, %s1973_s8, %s1986_s24, %s1976_s15, %s1821_s27, %s1821_s27, %s1822_s25  }
  0x6e PF: > { %p2127_p10 = scmp.ne.s32.totalorder %s2124_s30, 0 }
  0x6f   : > { %s2016_s16 = sand.u32 (!%p2127_p10), 1, %s1774_s19   ;;  %p2128_p2 = scmp.ne.s32.totalorder (!%p2127_p10), %s2122_s28, 0 }
  0x70   : > { %236 = sbr.rel (%p2127_p10) target bundleno = 679 (0x2a7), region = 40  ;;  %s239_s18 = scalar_lea.sflag (!%p2127_p10), [#allocation3], %s2016_s16 }
  0x71   : > { %s1446_s7 = smul.u32 (!%p2127_p10), 112, %s2016_s16 }
  0x73   : > { %s2020_s6 = scalar_lea.vmem (!%p2127_p10), [#allocation2], %s1446_s7 }
  0x77   : > { %1761 = dma.done.wait (%p2128_p2), %s239_s18, 1792  }
  0x78   : > { %1763 = vsyncadd (%p2128_p2), %s239_s18, 4294965504  ;;  %p2129_p13 = scmp.eq.s32.totalorder %s1874_s22, 0 }
  0x7a   : > { %1765 = dma.done.wait (%p2129_p13), [#allocation5], 7296   ;;  %p2130_p3 = pmov %p2129_p13 }
  0x7b   : > { %v1571_v0 = vld [vmem:[#allocation4 + $0x40] sm:$0xff]   ;;  %v1575_v4 = vld [vmem:[#allocation4 + $0x48] sm:$0xff]   ;;  %v1579_v8 = vld [vmem:[#allocation4 + $0x50] sm:$0xff]   ;;  %v1823_v43 = vmov 0.0   ;;  %vm1824_vm0 = vmmov 0   ;;  %vm708_vm1 = vcmask 130048  }
  0x7c   : > { %1767 = vsyncadd (%p2130_p3), [#allocation5], 4294960000  ;;  %v1572_v1 = vld [vmem:[#allocation4] sm:$0xff]   ;;  %1341 = vmatprep.subr.bf16.mxu0 %v1571_v0  ;;  %v1576_v5 = vld [vmem:[#allocation4 + $0x8] sm:$0xff]   ;;  %s1260_s8 = sshll.u32 %s2016_s16, 4  ;;  %vm993_vm2 = vcmask 80896  }
  0x7d   : > { %v1573_v2 = vld [vmem:[#allocation4 + $0xc0] sm:$0xff]   ;;  %1342 = vmatpush3.bf16.msra.mxu0 %v1572_v1  ;;  %v1577_v6 = vld [vmem:[#allocation4 + $0xc8] sm:$0xff]   ;;  %v1580_v9 = vld [vmem:[#allocation4 + $0x10] sm:$0xff]   ;;  %s2064_s17 = scalar_lea.vmem [#allocation7], %s1260_s8   ;;  %p2131_p6 = scmp.ne.s32.totalorder %s2123_s29, 0 }
  0x7e   : > { %v1574_v3 = vld [vmem:[#allocation4 + $0x80] sm:$0xff]   ;;  %1363 = vmatprep.subr.bf16.mxu1 %v1573_v2  ;;  %1343 = vmatprep.subr.bf16.mxu0 %v1575_v4  ;;  %v1578_v7 = vld [vmem:[#allocation4 + $0x88] sm:$0xff]   ;;  %v1581_v10 = vld [vmem:[#allocation4 + $0xd0] sm:$0xff]   ;;  %s1322_s21 = sshll.u32 (%p2131_p6), %s1874_s22, 1  ;;  %s1338_s9 = sshll.u32 (%p2131_p6), %s1874_s22, 4 }
  0x7f   : > { %1364 = vmatpush3.bf16.msra.mxu1 %v1574_v3  ;;  %v1582_v11 = vld [vmem:[#allocation4 + $0x90] sm:$0xff]   ;;  %v1583_v12 = vld [vmem:[#allocation4 + $0x58] sm:$0xff]   ;;  %v1587_v16 = vld [vmem:[#allocation4 + $0x60] sm:$0xff]   ;;  %s1004_s11 = ssub.s32 (%p2131_p6), 3, %s1322_s21  ;;  %s2075_s14 = scalar_lea.vmem (%p2131_p6), %s2117_s5, %s1338_s9  }
  0x80   : > { %1365 = vmatprep.subr.bf16.mxu1 %v1577_v6  ;;  %v1584_v13 = vld [vmem:[#allocation4 + $0x18] sm:$0xff]   ;;  %v1588_v17 = vld [vmem:[#allocation4 + $0x20] sm:$0xff]   ;;  %v1591_v20 = vld [vmem:[#allocation4 + $0x68] sm:$0xff]   ;;  %p1005_p7 = scmp.lt.s32.totalorder (%p2131_p6), %s1004_s11, 2 }
  0x81   : > { %1344 = vmatpush3.bf16.msra.mxu0 %v1576_v5  ;;  %v1585_v14 = vld [vmem:[#allocation4 + $0xd8] sm:$0xff]   ;;  %v1589_v18 = vld [vmem:[#allocation4 + $0xe0] sm:$0xff]   ;;  %v1592_v21 = vld [vmem:[#allocation4 + $0x28] sm:$0xff]  }
  0x82   : > { %1345 = vmatprep.subr.bf16.mxu0 %v1579_v8  ;;  %v1586_v15 = vld [vmem:[#allocation4 + $0x98] sm:$0xff]   ;;  %v1590_v19 = vld [vmem:[#allocation4 + $0xa0] sm:$0xff]   ;;  %v1593_v22 = vld [vmem:[#allocation4 + $0xe8] sm:$0xff]  }
  0x83   : > { %1366 = vmatpush3.bf16.msra.mxu1 %v1578_v7  ;;  %v1594_v23 = vld [vmem:[#allocation4 + $0xa8] sm:$0xff]   ;;  %v1595_v24 = vld [vmem:[#allocation4 + $0x70] sm:$0xff]   ;;  %v1599_v28 = vld [vmem:[#allocation4 + $0x78] sm:$0xff]  }
  0x84   : > { %1367 = vmatprep.subr.bf16.mxu1 %v1581_v10  ;;  %v1596_v25 = vld [vmem:[#allocation4 + $0x30] sm:$0xff]   ;;  %v1600_v29 = vld [vmem:[#allocation4 + $0x38] sm:$0xff]   ;;  %v1603_v38 = vld [vmem:[#allocation4 + $0x140] sm:$0xff]  }
  0x85   : > { %1346 = vmatpush3.bf16.msra.mxu0 %v1580_v9  ;;  %v1597_v26 = vld [vmem:[#allocation4 + $0xf0] sm:$0xff]   ;;  %v1601_v30 = vld [vmem:[#allocation4 + $0xf8] sm:$0xff]   ;;  %v1604_v42 = vld [vmem:[#allocation4 + $0x100] sm:$0xff]  }
  0x86   : > { %1347 = vmatprep.subr.bf16.mxu0 %v1583_v12  ;;  %v1598_v27 = vld [vmem:[#allocation4 + $0xb0] sm:$0xff]   ;;  %v289_v31 = vld [vmem:[%s2020_s6 + $0x8] sm:$0xff]  ;;  %v295_v36 = vld [vmem:[%s2020_s6 + $0x38] sm:$0xff] }
  0x87   : > { %1368 = vmatpush3.bf16.msra.mxu1 %v1582_v11  ;;  %v296_v32 = vld [vmem:[%s2020_s6 + $0x40] sm:$0xff]  ;;  %v1602_v34 = vld [vmem:[#allocation4 + $0xb8] sm:$0xff]   ;;  %v298_v40 = vld [vmem:[%s2020_s6 + $0x50] sm:$0xff] }
  0x88   : > { %1369 = vmatprep.subr.bf16.mxu1 %v1585_v14  ;;  %v303_v33 = vpack.c.bf16 %v296_v32, %v289_v31  ;;  %v288_v35 = vld [vmem:[%s2020_s6] sm:$0xff]  ;;  %v291_v39 = vld [vmem:[%s2020_s6 + $0x18] sm:$0xff]  ;;  %v290_v44 = vld [vmem:[%s2020_s6 + $0x10] sm:$0xff] }
  0x89   : > { %1348 = vmatpush3.bf16.msra.mxu0 %v1584_v13  ;;  %v302_v37 = vpack.c.bf16 %v295_v36, %v288_v35  ;;  %v305_v41 = vpack.c.bf16 %v298_v40, %v291_v39  ;;  %v297_v45 = vld [vmem:[%s2020_s6 + $0x48] sm:$0xff]  ;;  %v1607_v49 = vld [vmem:[#allocation4 + $0x150] sm:$0xff]   ;;  %v1611_v53 = vld [vmem:[#allocation4 + $0x160] sm:$0xff]  }
  0x8a   : > { %1349 = vmatprep.subr.bf16.mxu0 %v1587_v16  ;;  %744 = vmatprep.mubr.bf16.mxu0 %v303_v33  ;;  %v304_v46 = vpack.c.bf16 %v297_v45, %v290_v44  ;;  %v1605_v47 = vld [vmem:[#allocation4 + $0x148] sm:$0xff]   ;;  %v1608_v50 = vld [vmem:[#allocation4 + $0x110] sm:$0xff]   ;;  %v1609_v51 = vld [vmem:[#allocation4 + $0x158] sm:$0xff]  }
  0x8b   : > { %1370 = vmatpush3.bf16.msra.mxu1 %v1586_v15  ;;  %785 = vmatprep.mubr.bf16.mxu1 %v305_v41  ;;  %v1606_v48 = vld [vmem:[#allocation4 + $0x108] sm:$0xff]   ;;  %v1610_v52 = vld [vmem:[#allocation4 + $0x118] sm:$0xff]   ;;  %v1612_v54 = vld [vmem:[#allocation4 + $0x120] sm:$0xff]  }
  0x8c   : > { %1371 = vmatprep.subr.bf16.mxu1 %v1589_v18  ;;  %v1613_v55 = vld [vmem:[#allocation4 + $0x168] sm:$0xff]   ;;  %v1619_v56 = vld [vmem:[#allocation4 + $0x180] sm:$0xff]   ;;  %v1615_v59 = vld [vmem:[#allocation4 + $0x170] sm:$0xff]  }
  0x8d   : > { %1350 = vmatpush3.bf16.msra.mxu0 %v1588_v17  ;;  %v293_v57 = vld [vmem:[%s2020_s6 + $0x28] sm:$0xff]  ;;  %v300_v60 = vld [vmem:[%s2020_s6 + $0x60] sm:$0xff]  ;;  %v294_v62 = vld [vmem:[%s2020_s6 + $0x30] sm:$0xff] }
  0x8e   : > { %1351 = vmatprep.subr.bf16.mxu0 %v1591_v20  ;;  %v1614_v58 = vld [vmem:[#allocation4 + $0x128] sm:$0xff]   ;;  %v307_v61 = vpack.c.bf16 %v300_v60, %v293_v57  ;;  %v1616_v1 = vld [vmem:[#allocation4 + $0x130] sm:$0xff]   ;;  %v1617_v2 = vld [vmem:[#allocation4 + $0x178] sm:$0xff]  }
  0x8f   : > { %1372 = vmatpush3.bf16.msra.mxu1 %v1590_v19  ;;  %v301_v63 = vld [vmem:[%s2020_s6 + $0x68] sm:$0xff]  ;;  %v292_v4 = vld [vmem:[%s2020_s6 + $0x20] sm:$0xff]  ;;  %v299_v5 = vld [vmem:[%s2020_s6 + $0x58] sm:$0xff] }
  0x90   : > { %1373 = vmatprep.subr.bf16.mxu1 %v1593_v22  ;;  %v308_v0 = vpack.c.bf16 %v301_v63, %v294_v62  ;;  %v1618_v3 = vld [vmem:[#allocation4 + $0x138] sm:$0xff]   ;;  %v306_v6 = vpack.c.bf16 %v299_v5, %v292_v4  ;;  %v1620_v7 = vld [vmem:[#allocation6] sm:$0xff]   ;;  %v1621_v8 = vld [vmem:[#allocation6 + $0x8] sm:$0xff]  }
  0x91   : > { %1352 = vmatpush3.bf16.msra.mxu0 %v1592_v21  ;;  %v1622_v9 = vld [vmem:[#allocation6 + $0x10] sm:$0xff]   ;;  %v1623_v10 = vld [vmem:[#allocation6 + $0x18] sm:$0xff]   ;;  %v1624_v11 = vld [vmem:[#allocation6 + $0x20] sm:$0xff]  }
  0x92   : > { %1353 = vmatprep.subr.bf16.mxu0 %v1595_v24  ;;  %v1625_v12 = vld [vmem:[#allocation6 + $0x28] sm:$0xff]   ;;  %v1626_v13 = vld [vmem:[#allocation6 + $0x30] sm:$0xff]   ;;  %v1627_v14 = vld [vmem:[#allocation6 + $0x38] sm:$0xff]  }
  0x93   : > { %1374 = vmatpush3.bf16.msra.mxu1 %v1594_v23  ;;  %v1261_v16 = vld [vmem:[%s2114_s2] ss:$0 sm:$0xff] }
  0x94   : > { %1375 = vmatprep.subr.bf16.mxu1 %v1597_v26 }
  0x95   : > { %1354 = vmatpush3.bf16.msra.mxu0 %v1596_v25 }
  0x96   : > { %1355 = vmatprep.subr.bf16.mxu0 %v1599_v28 }
  0x97   : > { %1376 = vmatpush3.bf16.msra.mxu1 %v1598_v27 }
  0x98   : > { %1377 = vmatprep.subr.bf16.mxu1 %v1601_v30 }
  0x99   : > { %1356 = vmatpush3.bf16.msra.mxu0 %v1600_v29 }
  0x9a   : > { %1385 = vmatprep.subr.bf16.mxu0 %v1603_v38 }
  0x9b   : > { %1378 = vmatpush3.bf16.msra.mxu1 %v1602_v34 }
  0x9c   : > { %1418 = vmatprep.subr.bf16.mxu1 %v1823_v43  ;;  %745 = vmatmul.mubr.bf16.vlgmr.msra.gmra.mrb[0].mxu0 %v302_v37 }
  0x9d   : > { %1386 = vmatpush3.bf16.msra.mxu0 %v1604_v42  ;;  %826 = vmatprep.mubr.bf16.mxu0 %v307_v61 }
  0x9e   : > { %786 = vmatmul.mubr.bf16.vlgmr.msra.gmra.mrb[0].mxu1 %v304_v46  ;;  %1387 = vmatprep.subr.bf16.mxu0 %v1605_v47 }
  0x9f   : > { %1420 = vmatprep.mubr.msk.bf16.mxu1 %vm1824_vm0, %v1823_v43  ;;  %1419 = vmatpush3.bf16.msra.mxu1 %v1619_v56 }
  0xa0   : > { %1424 = vmatprep.subr.bf16.mxu1 %v1823_v43 }
  0xa1   : > { %1388 = vmatpush3.bf16.msra.mxu0 %v1606_v48 }
  0xa2   : > { %1389 = vmatprep.subr.bf16.mxu0 %v1607_v49  ;;  %v1320_v49 = vld [vmem:[%s2116_s4] ss:$0 sm:$0xff] }
  0xa5   : > { %1390 = vmatpush3.bf16.msra.mxu0 %v1608_v50 }
  0xa6   : > { %1391 = vmatprep.subr.bf16.mxu0 %v1609_v51  ;;  %1421 = vmatmul.mubr.msk.bf16.vlgmr.msra.gmra.mrb[4].mxu1 %vm708_vm1, %v308_v0 }
  0xa7   : > { %1440 = vmatprep.mubr.msk.bf16.mxu1 %vm1824_vm0, %v1823_v43  ;;  %1425 = vmatpush3.bf16.msra.mxu1 %v1620_v7 }
  0xa8   : > { %1426 = vmatprep.subr.bf16.mxu1 %v1823_v43 }
  0xa9   : > { %1392 = vmatpush3.bf16.msra.mxu0 %v1610_v52 }
  0xaa   : > { %1393 = vmatprep.subr.bf16.mxu0 %v1611_v53 }
  0xab   : > { %1427 = vmatpush3.bf16.msra.mxu1 %v1621_v8 }
  0xac   : > { %1428 = vmatprep.subr.bf16.mxu1 %v1823_v43 }
  0xad   : > { %1394 = vmatpush3.bf16.msra.mxu0 %v1612_v54 }
  0xae   : > { %1395 = vmatprep.subr.bf16.mxu0 %v1613_v55 }
  0xaf   : > { %1429 = vmatpush3.bf16.msra.mxu1 %v1622_v9 }
  0xb0   : > { %1430 = vmatprep.subr.bf16.mxu1 %v1823_v43 }
  0xb1   : > { %1396 = vmatpush3.bf16.msra.mxu0 %v1614_v58 }
  0xb2   : > { %1397 = vmatprep.subr.bf16.mxu0 %v1615_v59 }
  0xb3   : > { %1431 = vmatpush3.bf16.msra.mxu1 %v1623_v10 }
  0xb4   : > { %1432 = vmatprep.subr.bf16.mxu1 %v1823_v43 }
  0xb5   : > { %1398 = vmatpush3.bf16.msra.mxu0 %v1616_v1 }
  0xb6   : > { %1399 = vmatprep.subr.bf16.mxu0 %v1617_v2 }
  0xb7   : > { %1433 = vmatpush3.bf16.msra.mxu1 %v1624_v11 }
  0xb8   : > { %1434 = vmatprep.subr.bf16.mxu1 %v1823_v43 }
  0xb9   : > { %1400 = vmatpush3.bf16.msra.mxu0 %v1618_v3 }
  0xbb   : > { %1435 = vmatpush3.bf16.msra.mxu1 %v1625_v12 }
  0xbc   : > { %827 = vmatmul.mubr.bf16.vlgmr.msra.gmra.mrb[4].mxu0 %v306_v6  ;;  %1436 = vmatprep.subr.bf16.mxu1 %v1823_v43 }
  0xbf   : > { %1437 = vmatpush3.bf16.msra.mxu1 %v1626_v13 }
  0xc0   : > { %1438 = vmatprep.subr.bf16.mxu1 %v1823_v43 }
  0xc3   : > { %1439 = vmatpush3.bf16.msra.mxu1 %v1627_v14 }
 0x16f   : > { %v1357_v15 = vpop.f32.mrb[0].mxu0 }
 0x170   : > { %v1358_v17 = vpop.f32.mrb[1].mxu0 }
 0x171   : > { %v1359_v18 = vadd.f32 %v1358_v17, %v1357_v15  ;;  %v1360_v19 = vpop.f32.mrb[2].mxu0  ;;  %v1379_v20 = vpop.f32.mrb[0].mxu1 }
 0x172   : > { %v1361_v21 = vpop.f32.mrb[3].mxu0  ;;  %v1380_v24 = vpop.f32.mrb[1].mxu1 }
 0x173   : > { %v747_v22 = vadd.f32 %v1359_v18, %v1261_v16  ;;  %v1362_v23 = vadd.f32 %v1361_v21, %v1360_v19  ;;  %v1381_v25 = vadd.f32 %v1380_v24, %v1379_v20  ;;  %v1382_v26 = vpop.f32.mrb[2].mxu1 }
 0x174   : > { %v1383_v28 = vpop.f32.mrb[3].mxu1 }
 0x175   : > { %v750_v27 = vadd.f32 %v1362_v23, %v1261_v16  ;;  %v788_v29 = vadd.f32 %v1381_v25, %v747_v22  ;;  %v1384_v30 = vadd.f32 %v1383_v28, %v1382_v26 }
 0x177   : > { %v791_v31 = vadd.f32 %v1384_v30, %v750_v27 }
 0x179   : > { %v869_v32 = vpop.f32.mrb[4].mxu1 }
 0x17a   : > { %v1422_v33 = vpop.f32.mrb[5].mxu1 }
 0x17b   : > { %v872_v34 = vpop.f32.mrb[6].mxu1 }
 0x17c   : > { %v1423_v35 = vpop.f32.mrb[7].mxu1 }
 0x18f   : > { %v1401_v36 = vpop.f32.mrb[4].mxu0 }
 0x190   : > { %v1402_v37 = vpop.f32.mrb[5].mxu0 }
 0x191   : > { %v1403_v38 = vadd.f32 %v1402_v37, %v1401_v36  ;;  %v1404_v39 = vpop.f32.mrb[6].mxu0 }
 0x192   : > { %v1405_v40 = vpop.f32.mrb[7].mxu0 }
 0x193   : > { %v829_v41 = vadd.f32 %v1403_v38, %v788_v29  ;;  %v1406_v42 = vadd.f32 %v1405_v40, %v1404_v39 }
 0x195   : > { %v870_v43 = vadd.f32 %v869_v32, %v829_v41  ;;  %v832_v44 = vadd.f32 %v1406_v42, %v791_v31 }
 0x197   : > { %v873_v45 = vadd.f32 %v872_v34, %v832_v44  ;;  %v876_v46 = vmax.f32 %v870_v43, 0.0 }
 0x199   : > { %v877_v47 = vmax.f32 %v873_v45, 0.0 }
 0x19b   : > { %v878_v48 = vpack.c.bf16 %v877_v47, %v876_v46 }
 0x19d   : > { %1441 = vmatmul.mubr.bf16.vlgmr.msra.gmra.mrb[8].mxu1 %v878_v48 }
 0x26f   : > { %1002 = sbr.rel (!%p2131_p6) target bundleno = 679 (0x2a7), region = 56 }
 0x270   : > { %v977_v50 = vpop.f32.mrb[8].mxu1 }
 0x271   : > { %v991_v51 = vadd.f32 %v1320_v49, %v977_v50  ;;  %v1442_v52 = vpop.f32.mrb[9].mxu1 }
 0x272   : > { %v980_v53 = vpop.f32.mrb[10].mxu1 }
 0x273   : > { %994 = vst.msk [vmem:[%s2064_s17] sm:$0xff] %vm993_vm2, %v991_v51  ;;  %v992_v54 = vadd.f32 %v1320_v49, %v980_v53  ;;  %v1443_v55 = vpop.f32.mrb[11].mxu1 }
 0x275   : > { %995 = vst.msk [vmem:[%s2064_s17 + $0x8] sm:$0xff] %vm993_vm2, %v992_v54 }
 0x276   : > { %s2139_s11 = smov (!%p1005_p7, %s1004_s11), 2 }
 0x277   : > { %s1323_s10 = sshll.u32 %s2139_s11, 7 }
 0x278   : > { %p1326_p9 = scmp.eq.s32.totalorder %s1323_s10, 0 }
 0x279   : > { %s2081_s29 = sshrl.u32 (!%p1326_p9), %s2139_s11, 1 }
 0x27a   : > { %1013 = sbr.rel (%p1326_p9) target bundleno = 679 (0x2a7), region = 60  ;;  %p1327_p12 = scmp.le.s32.totalorder (!%p1326_p9), %s2081_s29, 0 }
 0x281   : > { %1180 = sbr.rel (%p1327_p12) target bundleno = 658 (0x292), region = 142  ;;  %s1784_s22 = smov (!%p1327_p12), %s2075_s14  }
 0x282   : > { %s1788_s27 = smov (!%p1327_p12), %s2064_s17   ;;  %s1792_s25 = smov (!%p1327_p12), 0  }
 0x283   : > { %s1796_s16 = smov (!%p1327_p12), 0  }
 0x288 LB: >> { %v1077_v56 = vld [vmem:[%s1790_s27] sm:$0xff]  ;;  %v1079_v57 = vld [vmem:[%s1790_s27 + $0x8] sm:$0xff]  ;;  %s1081_s7 = sadd.s32 1, %s1794_s25  ;;  %s1071_s16 = sadd.s32 1, %s1798_s16   ;;  %s1798_s16 = sphi %s1796_s16, %s1071_s16   ;;  %s1794_s25 = sphi %s1792_s25, %s1793_s25   ;;  %s1790_s27 = sphi %s1788_s27, %s1086_s27   ;;  %s1786_s22 = sphi %s1784_s22, %s1087_s22  }
 0x289   : >> { %1078 = vst [vmem:[%s1786_s22] sm:$0xff] %v1077_v56  ;;  %1080 = vst [vmem:[%s1786_s22 + $0x8] sm:$0xff] %v1079_v57  ;;  %p1082_p0 = scmp.ge.s32.totalorder %s1081_s7, %s2081_s29  ;;  %p1070_p4 = scmp.ge.s32.totalorder %s1071_s16, %s2081_s29 }
 0x28b   : >> { %s2141_s7 = smov (%p1082_p0, %s1081_s7), 0  ;;  %1073 = sbr.rel (!%p1070_p4) target bundleno = 648 (0x288), region = 148 }
 0x28c   : >> { %s1328_s18 = sshll.u32 %s2141_s7, 4  ;;  %s1793_s25 = smov %s2141_s7  }
 0x28d   : >> { %s1086_s27 = scalar_lea.vmem %s2064_s17, %s1328_s18 [#allocation7]   ;;  %s1087_s22 = scalar_lea.vmem %s2075_s14, %s1328_s18  }
 0x292 PF: > { %s2091_s6 = sand.u32 1, %s2139_s11   ;;  %s1339_s28 = sshll.u32 %s2081_s29, 4 }
 0x293   : > { %s1092_s30 = scalar_lea.vmem %s2064_s17, %s1339_s28 [#allocation7]   ;;  %s1094_s8 = scalar_lea.vmem %s2075_s14, %s1339_s28  }
 0x294   : > { %p1333_p1 = scmp.le.s32.totalorder %s2091_s6, 0 }
 0x295   : > { %s1800_s15 = smov (!%p1333_p1), %s1094_s8   ;;  %s1804_s24 = smov (!%p1333_p1), %s1092_s30  }
 0x296   : > { %1194 = sbr.rel (%p1333_p1) target bundleno = 679 (0x2a7), region = 153  ;;  %s1808_s21 = smov (!%p1333_p1), 0  }
 0x297   : > { %s1812_s9 = smov (!%p1333_p1), 0  }
 0x29d LB: >> { %v1104_v58 = vld [vmem:[%s1806_s24] sm:$0xff]  ;;  %s1106_s11 = sadd.s32 1, %s1810_s21  ;;  %s1098_s9 = sadd.s32 1, %s1814_s9   ;;  %s1814_s9 = sphi %s1812_s9, %s1098_s9   ;;  %s1810_s21 = sphi %s1808_s21, %s1809_s21   ;;  %s1806_s24 = sphi %s1804_s24, %s1111_s24   ;;  %s1802_s15 = sphi %s1800_s15, %s1112_s15  }
 0x29e   : >> { %1105 = vst [vmem:[%s1802_s15] sm:$0xff] %v1104_v58  ;;  %p1107_p5 = scmp.ge.s32.totalorder %s1106_s11, %s2091_s6  ;;  %p1097_p8 = scmp.ge.s32.totalorder %s1098_s9, %s2091_s6 }
 0x2a0   : >> { %s2143_s11 = smov (%p1107_p5, %s1106_s11), 0  ;;  %1100 = sbr.rel (!%p1097_p8) target bundleno = 669 (0x29d), region = 159 }
 0x2a1   : >> { %s1334_s17 = sshll.u32 %s2143_s11, 3  ;;  %s1809_s21 = smov %s2143_s11  }
 0x2a2   : >> { %s1111_s24 = scalar_lea.vmem %s1092_s30, %s1334_s17 [#allocation7]   ;;  %s1112_s15 = scalar_lea.vmem %s1094_s8, %s1334_s17  }
 0x2a7 PF: > { %p16_p11 = scmp.ge.s32.totalorder %s1877_s23, 4   ;;  %s2132_s18 = smov %s1774_s19 }
 0x2a8   : > { %s2133_s19 = smov %s1778_s20  ;;  %s2134_s20 = smov %s1887_s26 }
 0x2a9   : > { %s2135_s21 = smov %s1877_s23  ;;  %18 = sbr.rel (!%p16_p11) target bundleno = 4 (0x4), region = 170 }
 0x2b0   :  { %1128 = vsyncpa [#allocation3], 1 }
 0x2b1   :  { %1130 = vsyncpa [#allocation3 + $0x1], 1 }
 0x2b2   :  { %1131 = vsyncpa [#allocation5], 1 }

</bundles_post_ra>
